<compile_context>
chip_gen: v5e
topology: v5e:2x2
jax: 0.10.0
libtpu: 0.0.40
codegen_flags: <defaults>
</compile_context>

<pallas_src>
import functools

import jax
import jax.numpy as jnp
import numpy as np
from jax.experimental import pallas as pl
from jax.experimental.pallas import tpu as pltpu


def _round_up(n, m):
    return (n + m - 1) // m * m


def _critic_kernel(x_ref, a_ref, w_ref, aux_ref, o_ref,
                   *, S, A, H1p, H2p, r_w2a, r_w2b):
    x = x_ref[...]                                   # (tile_b, S)
    a = a_ref[...]                                   # (tile_b, A)

    # fc1 + relu  (MXU matmul, K = S, N = H1p lane-aligned).
    b1 = aux_ref[0:1, 0:H1p]
    h1 = jnp.maximum(
        jnp.dot(x, w_ref[0:S, 0:H1p], preferred_element_type=jnp.float32) + b1,
        0.0)

    # fc2 + relu: concat([h1, a]) @ W2 == h1 @ W2[:H1] + a @ W2[H1:].
    # Two MXU matmuls keep h1 in vregs (no VMEM concat scratch round trip).
    b2 = aux_ref[1:2, 0:H2p]
    h2 = jnp.maximum(
        jnp.dot(h1, w_ref[r_w2a:r_w2a + H1p, 0:H2p],
                preferred_element_type=jnp.float32)
        + jnp.dot(a, w_ref[r_w2b:r_w2b + A, 0:H2p],
                  preferred_element_type=jnp.float32)
        + b2,
        0.0)

    # fc3 (out_features = 1): VPU multiply + XLU cross-lane reduce; stored
    # lane-dense (tile_b q-values along lanes).
    w3_row = aux_ref[2:3, 0:H2p]                     # (1, H2p)
    b3 = aux_ref[3:4, 0:1]                           # (1, 1)
    q = jnp.sum(h2 * w3_row, axis=-1)[None, :] + b3  # (1, tile_b)
    o_ref[0] = q


def pack_critic_params(params, states_dim, actions_dim, hidden1, hidden2):
    """Pack (w1, b1, w2, b2, w3, b3) into one weight slab + one aux array.

    Weight slab (vertically stacked, 128-lane padded so every in-kernel slice
    is an aligned view and the MXU N dims are multiples of 128):
      slab[0      : S,              0 : H1p] = W1            [S, H1]
      slab[r_w2a  : r_w2a + H1,     0 : H2p] = W2[:H1]       (h1 part)
      slab[r_w2b  : r_w2b + A,      0 : H2p] = W2[H1:]       (action part)
    with H1p = round_up(H1,128), H2p = round_up(H2,128), r_w2a = round_up(S,8),
    r_w2b = r_w2a + H1p.  Zero padding is exact: relu(0 + 0) = 0 and the w3
    tail is zero.

    Aux ([8, max(H1p, H2p)]):
      aux[0, :H1] = b1, aux[1, :H2] = b2, aux[2, :H2] = W3[:, 0], aux[3, 0] = b3
    """
    w1, b1, w2, b2, w3, b3 = params
    S, A, H1, H2 = states_dim, actions_dim, hidden1, hidden2
    H1p = _round_up(H1, 128)
    H2p = _round_up(H2, 128)
    r_w2a = _round_up(S, 8)
    r_w2b = r_w2a + H1p

    rows = _round_up(r_w2b + A, 8)
    cols = max(H1p, H2p)

    slab = jnp.zeros((rows, cols), jnp.float32)
    slab = slab.at[:S, :H1].set(w1)
    slab = slab.at[r_w2a:r_w2a + H1, :H2].set(w2[:H1])
    slab = slab.at[r_w2b:r_w2b + A, :H2].set(w2[H1:])

    aux = jnp.zeros((8, cols), jnp.float32)
    aux = aux.at[0, :H1].set(b1.reshape(-1))
    aux = aux.at[1, :H2].set(b2.reshape(-1))
    aux = aux.at[2, :H2].set(w3.reshape(-1))
    aux = aux.at[3, 0].set(b3.reshape(-1)[0])

    dims = dict(S=S, A=A, H1p=H1p, H2p=H2p, r_w2a=r_w2a, r_w2b=r_w2b)
    return slab, aux, dims


def critic_forward(x, a, packed, *, tile_b=None):
    """x: [B, S], a: [B, A]  ->  q: [B, 1] float32."""
    slab, aux, dims = packed
    S, A = dims["S"], dims["A"]
    H1p, H2p = dims["H1p"], dims["H2p"]
    r_w2a, r_w2b = dims["r_w2a"], dims["r_w2b"]
    B = x.shape[0]

    if tile_b is None:
        # Aim for >= 2 grid steps so both v7x TensorCores get work through
        # dimension_semantics=("parallel",); cap at 1024 rows per tile, which
        # amortizes the ~0.35us per-grid-step overhead while staying far
        # inside the scoped VMEM limit on every generation (incl. v7x 64 MiB).
        tile_b = min(_round_up(pl.cdiv(B, 2), 8), 1024)
    if tile_b >= B:
        tile_b = B                       # single full-batch tile (always legal)
    elif tile_b % 8 != 0:
        tile_b = _round_up(tile_b, 8)

    num_tiles = pl.cdiv(B, tile_b)
    kernel = functools.partial(_critic_kernel, S=S, A=A, H1p=H1p, H2p=H2p,
                               r_w2a=r_w2a, r_w2b=r_w2b)

    out = pl.pallas_call(
        kernel,
        # Lane-dense output: one (1, tile_b) row of q-values per grid step.
        out_shape=jax.ShapeDtypeStruct((num_tiles, 1, tile_b), jnp.float32),
        grid_spec=pltpu.PrefetchScalarGridSpec(
            num_scalar_prefetch=0,
            grid=(num_tiles,),
            in_specs=[
                pl.BlockSpec((tile_b, S), lambda i: (i, 0)),
                pl.BlockSpec((tile_b, A), lambda i: (i, 0)),
                # Weights / biases: constant index_map -> DMA'd only once.
                pl.BlockSpec(slab.shape, lambda i: (0, 0)),
                pl.BlockSpec(aux.shape, lambda i: (0, 0)),
            ],
            out_specs=pl.BlockSpec((1, 1, tile_b), lambda i: (i, 0, 0)),
        ),
        compiler_params=pltpu.CompilerParams(
            dimension_semantics=("parallel",)),
    )(x, a, slab, aux)

    # (num_tiles, 1, tile_b) -> (B, 1); drops the garbage rows of a ragged
    # last tile (rows are independent, so valid outputs are unaffected).
    return out.reshape(num_tiles * tile_b, 1)[:B]


def init_critic_params(key, states_dim, actions_dim, hidden1, hidden2,
                       init_w=0.003):
    """Deterministic init mirroring the PyTorch module's init_weights.

    PyTorch weights are [out, in]; fanin_init uses size[0] (= out_features) as
    the fan. Weights here are stored pre-transposed as [in, out].
    """
    k1, k2, k3, kb1, kb2, kb3 = jax.random.split(key, 6)

    v1 = 1.0 / np.sqrt(hidden1)           # fanin_init on fc1.weight: size[0] = hidden1
    v2 = 1.0 / np.sqrt(hidden2)           # fanin_init on fc2.weight: size[0] = hidden2
    vb1 = 1.0 / np.sqrt(states_dim)       # default nn.Linear bias bounds
    vb2 = 1.0 / np.sqrt(hidden1 + actions_dim)
    vb3 = 1.0 / np.sqrt(hidden2)

    w1 = jax.random.uniform(k1, (states_dim, hidden1), jnp.float32, -v1, v1)
    b1 = jax.random.uniform(kb1, (hidden1,), jnp.float32, -vb1, vb1)

    w2 = jax.random.uniform(k2, (hidden1 + actions_dim, hidden2), jnp.float32,
                            -v2, v2)
    b2 = jax.random.uniform(kb2, (hidden2,), jnp.float32, -vb2, vb2)

    w3 = jax.random.uniform(k3, (hidden2, 1), jnp.float32, -init_w, init_w)
    b3 = jax.random.uniform(kb3, (1,), jnp.float32, -vb3, vb3)

    return (w1, b1, w2, b2, w3, b3)


def critic_reference(x, a, params):
    """Pure-JAX reference of the PyTorch forward (correctness check)."""
    w1, b1, w2, b2, w3, b3 = params
    h1 = jnp.maximum(x @ w1 + b1, 0.0)
    h2 = jnp.maximum(jnp.concatenate([h1, a], axis=1) @ w2 + b2, 0.0)
    return h2 @ w3 + b3


if __name__ == "__main__":
    B = 8
    states_dim = 16
    actions_dim = 4
    hidden1 = 32
    hidden2 = 32

    key = jax.random.PRNGKey(0)
    kx, ka, kp = jax.random.split(key, 3)

    x = jax.random.normal(kx, (B, states_dim), jnp.float32)
    a = jax.random.normal(ka, (B, actions_dim), jnp.float32)
    params = init_critic_params(kp, states_dim, actions_dim, hidden1, hidden2)
    packed = pack_critic_params(params, states_dim, actions_dim,
                                hidden1, hidden2)

    q = critic_forward(x, a, packed)
    q = jax.block_until_ready(q)

    q_ref = critic_reference(x, a, params)
    np.testing.assert_allclose(np.asarray(q), np.asarray(q_ref),
                               rtol=1e-5, atol=1e-5)
    assert q.shape == (B, 1)

    print("KERNEL_OK")
</pallas_src>

<mosaic_0001>
module attributes {stable_mosaic.version = 11 : i64} {
  func.func @_critic_kernel(%arg0: i32, %arg1: memref<8x16xf32, #tpu.memory_space<vmem>>, %arg2: memref<8x4xf32, #tpu.memory_space<vmem>>, %arg3: memref<152x128xf32, #tpu.memory_space<vmem>>, %arg4: memref<8x128xf32, #tpu.memory_space<vmem>>, %arg5: memref<1x1x8xf32, #tpu.memory_space<vmem>>) attributes {dimension_semantics = [#tpu.dimension_semantics<parallel>], iteration_bounds = array<i64: 1>, scalar_prefetch = 0 : i64, scratch_operands = 0 : i64, tpu.core_type = #tpu.core_type<tc>, window_params = [{transform_indices = @transform_0, window_bounds = array<i64: 8, 16>}, {transform_indices = @transform_1, window_bounds = array<i64: 8, 4>}, {pipeline_mode = #tpu.pipeline_mode<synchronous>, transform_indices = @transform_2, window_bounds = array<i64: 152, 128>}, {pipeline_mode = #tpu.pipeline_mode<synchronous>, transform_indices = @transform_3, window_bounds = array<i64: 8, 128>}, {transform_indices = @transform_4, window_bounds = array<i64: 1, 1, 8>}]} {
    %c0 = arith.constant 0 : index
    %c0_0 = arith.constant 0 : index
    %0 = vector.load %arg1[%c0, %c0_0] : memref<8x16xf32, #tpu.memory_space<vmem>>, vector<8x16xf32>
    %c0_1 = arith.constant 0 : index
    %c0_2 = arith.constant 0 : index
    %1 = vector.load %arg2[%c0_1, %c0_2] : memref<8x4xf32, #tpu.memory_space<vmem>>, vector<8x4xf32>
    %c0_3 = arith.constant 0 : index
    %c0_4 = arith.constant 0 : index
    %2 = vector.load %arg4[%c0_3, %c0_4] : memref<8x128xf32, #tpu.memory_space<vmem>>, vector<1x128xf32>
    %c0_5 = arith.constant 0 : index
    %c0_6 = arith.constant 0 : index
    %3 = vector.load %arg3[%c0_5, %c0_6] : memref<152x128xf32, #tpu.memory_space<vmem>>, vector<16x128xf32>
    %cst = arith.constant dense<0.000000e+00> : vector<8x128xf32>
    %4 = tpu.matmul %0, %3, %cst {dimension_numbers = #tpu.dot_dimension_numbers<[1], [0], [0], [1], [0, 0, 1, 1], [], []>} : vector<8x16xf32>, vector<16x128xf32>, vector<8x128xf32> -> vector<8x128xf32>
    %5 = vector.broadcast %2 : vector<1x128xf32> to vector<8x128xf32>
    %6 = arith.addf %4, %5 : vector<8x128xf32>
    %cst_7 = arith.constant 0.000000e+00 : f32
    %7 = vector.broadcast %cst_7 : f32 to vector<8x128xf32>
    %8 = arith.maximumf %6, %7 : vector<8x128xf32>
    %c1 = arith.constant 1 : index
    %c0_8 = arith.constant 0 : index
    %9 = vector.load %arg4[%c1, %c0_8] : memref<8x128xf32, #tpu.memory_space<vmem>>, vector<1x128xf32>
    %c16 = arith.constant 16 : index
    %c0_9 = arith.constant 0 : index
    %10 = vector.load %arg3[%c16, %c0_9] : memref<152x128xf32, #tpu.memory_space<vmem>>, vector<128x128xf32>
    %cst_10 = arith.constant dense<0.000000e+00> : vector<8x128xf32>
    %11 = tpu.matmul %8, %10, %cst_10 {dimension_numbers = #tpu.dot_dimension_numbers<[1], [0], [0], [1], [0, 0, 1, 1], [], []>} : vector<8x128xf32>, vector<128x128xf32>, vector<8x128xf32> -> vector<8x128xf32>
    %c144 = arith.constant 144 : index
    %c0_11 = arith.constant 0 : index
    %12 = vector.load %arg3[%c144, %c0_11] : memref<152x128xf32, #tpu.memory_space<vmem>>, vector<4x128xf32>
    %cst_12 = arith.constant dense<0.000000e+00> : vector<8x128xf32>
    %13 = tpu.matmul %1, %12, %cst_12 {dimension_numbers = #tpu.dot_dimension_numbers<[1], [0], [0], [1], [0, 0, 1, 1], [], []>} : vector<8x4xf32>, vector<4x128xf32>, vector<8x128xf32> -> vector<8x128xf32>
    %14 = arith.addf %11, %13 : vector<8x128xf32>
    %15 = vector.broadcast %9 : vector<1x128xf32> to vector<8x128xf32>
    %16 = arith.addf %14, %15 : vector<8x128xf32>
    %cst_13 = arith.constant 0.000000e+00 : f32
    %17 = vector.broadcast %cst_13 : f32 to vector<8x128xf32>
    %18 = arith.maximumf %16, %17 : vector<8x128xf32>
    %c2 = arith.constant 2 : index
    %c0_14 = arith.constant 0 : index
    %19 = vector.load %arg4[%c2, %c0_14] : memref<8x128xf32, #tpu.memory_space<vmem>>, vector<1x128xf32>
    %c3 = arith.constant 3 : index
    %c0_15 = arith.constant 0 : index
    %20 = vector.load %arg4[%c3, %c0_15] : memref<8x128xf32, #tpu.memory_space<vmem>>, vector<1x1xf32>
    %21 = vector.broadcast %19 : vector<1x128xf32> to vector<8x128xf32>
    %22 = arith.mulf %18, %21 : vector<8x128xf32>
    %cst_16 = arith.constant dense<0.000000e+00> : vector<8xf32>
    %23 = vector.multi_reduction <add>, %22, %cst_16 [1] : vector<8x128xf32> to vector<8xf32>
    %24 = vector.shape_cast %23 : vector<8xf32> to vector<1x8xf32>
    %25 = vector.broadcast %20 : vector<1x1xf32> to vector<1x8xf32>
    %26 = arith.addf %24, %25 : vector<1x8xf32>
    %c0_17 = arith.constant 0 : index
    %c0_18 = arith.constant 0 : index
    %c0_19 = arith.constant 0 : index
    %27 = vector.load %arg5[%c0_17, %c0_18, %c0_19] : memref<1x1x8xf32, #tpu.memory_space<vmem>>, vector<1x1x8xf32>
    %28 = vector.shape_cast %27 : vector<1x1x8xf32> to vector<1x8xf32>
    %29 = vector.shape_cast %26 : vector<1x8xf32> to vector<1x1x8xf32>
    tpu.vector_store %arg5[%c0_17, %c0_18, %c0_19], %29 {strides = array<i32>} : memref<1x1x8xf32, #tpu.memory_space<vmem>>, vector<1x1x8xf32>,
    return
  }
  func.func @transform_0(%arg0: i32) -> (i32, i32) {
    %c0_i32 = arith.constant 0 : i32
    %c0_i32_0 = arith.constant 0 : i32
    return %arg0, %c0_i32 : i32, i32
  }
  func.func @transform_1(%arg0: i32) -> (i32, i32) {
    %c0_i32 = arith.constant 0 : i32
    %c0_i32_0 = arith.constant 0 : i32
    return %arg0, %c0_i32 : i32, i32
  }
  func.func @transform_2(%arg0: i32) -> (i32, i32) {
    %c0_i32 = arith.constant 0 : i32
    %c0_i32_0 = arith.constant 0 : i32
    %c0_i32_1 = arith.constant 0 : i32
    return %c0_i32, %c0_i32_0 : i32, i32
  }
  func.func @transform_3(%arg0: i32) -> (i32, i32) {
    %c0_i32 = arith.constant 0 : i32
    %c0_i32_0 = arith.constant 0 : i32
    %c0_i32_1 = arith.constant 0 : i32
    return %c0_i32, %c0_i32_0 : i32, i32
  }
  func.func @transform_4(%arg0: i32) -> (i32, i32, i32) {
    %c0_i32 = arith.constant 0 : i32
    %c0_i32_0 = arith.constant 0 : i32
    %c0_i32_1 = arith.constant 0 : i32
    return %arg0, %c0_i32, %c0_i32_0 : i32, i32, i32
  }
}

</mosaic_0001>

<bundles_post_ra>
// kernel: tpu_custom_call.1
= control target key start
LH: loop header
LB: loop body
LE: loop exit
PB: predicated region body
PF: predicated region fallthrough
CT: control target
= control target key end

     0   :  { %9 = vsyncpa [#allocation3], 0  ;;  %s327_s0 = inlined_call_operand.vmem [shape: f32[8,16], index: 0, kind: input, shape index: {}]   ;;  %s328_s1 = inlined_call_operand.vmem [shape: f32[8,4], index: 1, kind: input, shape index: {}]   ;;  %s329_s2 = inlined_call_operand.hbm [shape: f32[152,128], index: 2, kind: input, shape index: {}]   ;;  %s330_s3 = inlined_call_operand.hbm [shape: f32[8,128], index: 3, kind: input, shape index: {}]   ;;  %s331_s4 = inlined_call_operand.hbm [shape: f32[1,1,8], index: 4, kind: output, shape index: {}]  }
   0x1   :  { %10 = vsyncpa [#allocation6], 0 }
   0x2   :  { %11 = vsyncpa [#allocation4], 0  ;;  %s20_s17 = sshll.u32 %s329_s2, 4  ;;  %s281_s18 = smov [#allocation2]   ;;  %s21_s17 = int_to_ptr.hbm [resolvable:$true] %s20_s17 }
   0x3   :  { %s22_s19 = sshll.u32 %s281_s18, 4  ;;  %s34_s22 = sshll.u32 %s330_s3, 4  ;;  %s23_s19 = int_to_ptr.vmem [resolvable:$true] %s22_s19  ;;  %s35_s22 = int_to_ptr.hbm [resolvable:$true] %s34_s22 }
   0x4   :  { %s282_s23 = smov 128   ;;  %s283_s24 = smov 8  }
   0x5   :  { %28 = dma.hbm_to_vmem [thread:$0]  %s21_s17, 2432, %s23_s19, [#allocation3], %s282_s23, %s282_s23, %s283_s24  }
   0x6   :  { %s284_s25 = smov [#allocation5]  }
   0x7   :  { %s36_s26 = sshll.u32 %s284_s25, 4  ;;  %s37_s26 = int_to_ptr.vmem [resolvable:$true] %s36_s26 }
   0x8   :  { %39 = dma.hbm_to_vmem [thread:$0]  %s35_s22, 128, %s37_s26, [#allocation6]  }
   0x9   :  { %275 = dma.done.wait [#allocation3], 2432  }
   0xa   :  { %276 = vsyncadd [#allocation3], 4294964864 }
   0xb   :  { %277 = dma.done.wait [#allocation6], 128  }
   0xc   :  { %278 = vsyncadd [#allocation6], 4294967168  ;;  %v52_v0 = vld [vmem:[#allocation2 + $0x8] sm:$0xff]  ;;  %v51_v1 = vld [vmem:[#allocation2] sm:$0xff]  ;;  %vm54_vm0 = vcmask 130048   ;;  %vm101_vm1 = vcmask 1043456   ;;  %v165_v39 = vlaneseq }
   0xd   :  { %72 = vmatpush.msra.mxu0 %v52_v0  ;;  %v48_v2 = vld [vmem:[%s327_s0] sm:$0xff]  ;;  %v95_v3 = vld [vmem:[#allocation2 + $0x88] sm:$0xff]  ;;  %v93_v5 = vld [vmem:[#allocation2 + $0x78] sm:$0xff]  ;;  %vm97_vm2 = vcmask 31744   ;;  %v285_v21 = vmov 0   ;;  %s178_s5 = sshll.u32 %s331_s4, 4  ;;  %s179_s5 = int_to_ptr.hbm [resolvable:$true] %s178_s5 }
   0xe   :  { %v94_v4 = vld [vmem:[#allocation2 + $0x80] sm:$0xff]  ;;  %125 = vmatpush.msra.mxu2 %v95_v3  ;;  %v92_v6 = vld [vmem:[#allocation2 + $0x70] sm:$0xff]  ;;  %v91_v7 = vld [vmem:[#allocation2 + $0x68] sm:$0xff]  ;;  %198 = vset.pattern.permute.xlu0 %v285_v21  ;;  %v166_v40 = vand.u32 127, %v165_v39  ;;  %vm169_vm3 = vcmask 57344  }
   0xf   :  { %73 = vmatpush.msra.mxu0 %v51_v1  ;;  %v90_v8 = vld [vmem:[#allocation2 + $0x60] sm:$0xff]  ;;  %v89_v9 = vld [vmem:[#allocation2 + $0x58] sm:$0xff]  ;;  %v88_v10 = vld [vmem:[#allocation2 + $0x50] sm:$0xff]  ;;  %199 = vset.pattern.permute.xlu1 %v285_v21 }
  0x10   :  { %189 = vmatmul.msk.f32.vlgmr.msra.gmra.mxu0 %vm54_vm0, %v48_v2  ;;  %126 = vmatpush.msra.mxu2 %v94_v4  ;;  %v87_v11 = vld [vmem:[#allocation2 + $0x48] sm:$0xff]  ;;  %v86_v12 = vld [vmem:[#allocation2 + $0x40] sm:$0xff]  ;;  %v85_v13 = vld [vmem:[#allocation2 + $0x38] sm:$0xff] }
  0x11   :  { %v84_v14 = vld [vmem:[#allocation2 + $0x30] sm:$0xff]  ;;  %v83_v15 = vld [vmem:[#allocation2 + $0x28] sm:$0xff]  ;;  %v82_v16 = vld [vmem:[#allocation2 + $0x20] sm:$0xff] }
  0x12   :  { %127 = vmatpush.msra.mxu2 %v93_v5  ;;  %v81_v17 = vld [vmem:[#allocation2 + $0x18] sm:$0xff]  ;;  %v80_v18 = vld [vmem:[#allocation2 + $0x10] sm:$0xff]  ;;  %v49_v20 = vld [vmem:[%s328_s1] sm:$0xff]  ;;  %s286_s1 = smov [#allocation7]  }
  0x13   :  { %v96_v19 = vld [vmem:[#allocation2 + $0x90] sm:$0xf]  ;;  %v149_v22 = vld [vmem:[#allocation5 + $0x3] sm:$0x1]  ;;  %v200_v23 = vld [vmem:[#allocation5] ss:$0 sm:$0xff] }
  0x14   :  { %128 = vmatpush.msra.mxu2 %v92_v6  ;;  %190 = vmatpush.msk.msra.mxu1 %vm101_vm1, %v96_v19  ;;  %v201_v28 = vld [vmem:[#allocation5 + $0x1] ss:$0 sm:$0xff]  ;;  %v202_v32 = vld [vmem:[#allocation5 + $0x2] ss:$0 sm:$0xff]  ;;  %s176_s28 = sshll.u32 %s286_s1, 4  ;;  %s177_s28 = int_to_ptr.vmem [resolvable:$true] %s176_s28 }
  0x15   :  { %191 = vmatmul.msk.f32.vlgmr.msra.gmra.mxu1 %vm97_vm2, %v49_v20  ;;  %156 = vperm.xlu0 %198, %v149_v22  }
  0x16   :  { %129 = vmatpush.msra.mxu2 %v91_v7 }
  0x18   :  { %130 = vmatpush.msra.mxu2 %v90_v8 }
  0x1a   :  { %131 = vmatpush.msra.mxu2 %v89_v9 }
  0x1c   :  { %132 = vmatpush.msra.mxu2 %v88_v10 }
  0x1e   :  { %133 = vmatpush.msra.mxu2 %v87_v11 }
  0x20   :  { %134 = vmatpush.msra.mxu2 %v86_v12 }
  0x22   :  { %135 = vmatpush.msra.mxu2 %v85_v13 }
  0x24   :  { %136 = vmatpush.msra.mxu2 %v84_v14 }
  0x26   :  { %137 = vmatpush.msra.mxu2 %v83_v15 }
  0x28   :  { %138 = vmatpush.msra.mxu2 %v82_v16 }
  0x2a   :  { %139 = vmatpush.msra.mxu2 %v81_v17 }
  0x2c   :  { %140 = vmatpush.msra.mxu2 %v80_v18 }
  0x87   :  { %v157_v35 = vpop.permute.xlu0 %156 }
  0x88   :  { %v158_v36 = vperm.slane %v157_v35, 0 }
  0x8d   :  { %v75_v24 = vpop.f32.mrf.mxu0 }
  0x8e   :  { %v76_v25 = vadd.f32 %v200_v23, %v75_v24 }
  0x90   :  { %v78_v26 = vmax.f32 %v76_v25, 0.0 }
  0x92   :  { %141 = vmatmul.f32.vlgmr.msra.gmra.mxu2 %v78_v26  ;;  %v122_v27 = vpop.f32.mrf.mxu1 }
 0x115   :  { %v142_v29 = vpop.f32.mrf.mxu2 }
 0x116   :  { %v143_v30 = vadd.f32 %v142_v29, %v122_v27 }
 0x118   :  { %v146_v31 = vadd.f32 %v201_v28, %v143_v30 }
 0x11a   :  { %v147_v33 = vmax.f32 %v146_v31, 0.0 }
 0x11c   :  { %v151_v34 = vmul.f32 %v202_v32, %v147_v33 }
 0x11e   :  { %152 = vadd.xlane.f32.xlu0 %v151_v34 }
 0x191   :  { %v153_v37 = vpop.xlane.xlu0 %152 }
 0x192   :  { %v160_v38 = vadd.f32 %v158_v36, %v153_v37 }
 0x194   :  { %163 = vperm.xlu1 %199, %v160_v38  }
 0x206   :  { %v164_v41 = vpop.permute.xlu1 %163 }
 0x207   :  { %v167_v42 = vperm.slane %v164_v41, %v166_v40 }
 0x209   :  { %170 = vst.msk [vmem:[#allocation7] sm:$0x1] %vm169_vm3, %v167_v42 }
 0x20a   :  { %181 = dma.vmem_to_hbm [thread:$0]  %s177_s28, 16, %s179_s5, [#allocation4]  }
 0x20b   :  { %279 = dma.done.wait [#allocation4], 16  }
 0x20c   :  { %280 = vsyncadd [#allocation4], 4294967280 }
 0x20d   :  { %186 = vsyncpa [#allocation3], 1 }
 0x20e   :  { %187 = vsyncpa [#allocation6], 1 }
 0x20f   :  { %188 = vsyncpa [#allocation4], 1 }

</bundles_post_ra>
